<compile_context>
chip_gen: v6e
topology: v6e:2x2x1
jax: 0.10.0
libtpu: 0.0.40
codegen_flags: <defaults>
</compile_context>

<pallas_src>
import functools

import jax
import jax.numpy as jnp
from jax.experimental import pallas as pl
from jax.experimental.pallas import tpu as pltpu


MAX_TILE_HW = 2048          # v7x-safe spatial tile (v5e/v6e could use 4096+)
VMEM_LIMIT_BYTES = 32 * 1024 * 1024


def _round_up(x, m):
    return (x + m - 1) // m * m


# ----------------------------------------------------------------------------
# Multi-tile kernel (n_s >= 2): conv-as-matmul + bias + ReLU + [8,D] vreg-add
# GAP accumulation; GAP-normalize + bf16 projection head in last-step epilogue.
#   p_ref  : [1, tile_hw, Kp] bf16   (one batch's spatial tile of im2col patches)
#   wc_ref : [Kp, D]          bf16   (conv weight, im2col layout, zero-padded K)
#   bc_ref : [1, D]           f32    (conv bias)
#   wp_ref : [D, Np]          bf16   (projection weight, lane-padded N)
#   bp_ref : [1, Np]          f32    (projection bias, lane-padded N)
#   o_ref  : [1, 8, Np]       f32    (row 0 holds the logits for this batch elem)
#   acc_ref: [8, D]           f32    (running sublane-folded spatial sum)
# ----------------------------------------------------------------------------
def fused_kernel(p_ref, wc_ref, bc_ref, wp_ref, bp_ref, o_ref, acc_ref,
                 *, hw, tile_hw, inv_hw, n_s):
    s = pl.program_id(1)

    @pl.when(s == 0)
    def _init():
        acc_ref[...] = jnp.zeros_like(acc_ref)

    # conv-as-matmul on the MXU: [tile_hw, Kp] bf16 @ [Kp, D] bf16 -> f32
    h = jnp.dot(p_ref[0], wc_ref[...], preferred_element_type=jnp.float32)
    h = jnp.maximum(h + bc_ref[...], 0.0)                   # fused bias + ReLU

    d = h.shape[1]

    def fold(x):
        # [tile_hw, D] -> [8, D] via plain vreg adds (no cross-sublane traffic)
        return x.reshape(tile_hw // 8, 8, d).sum(axis=0)

    ragged = (n_s * tile_hw) > hw          # static: does padding exist at all?
    if ragged:
        # Full tiles: no mask work.
        @pl.when(s < n_s - 1)
        def _full():
            acc_ref[...] += fold(h)

        # Only the ragged last tile pays for iota + compare + select.
        @pl.when(s == n_s - 1)
        def _last_masked():
            rows = s * tile_hw + jax.lax.broadcasted_iota(
                jnp.int32, (tile_hw, 1), 0)
            acc_ref[...] += fold(jnp.where(rows < hw, h, 0.0))
    else:
        acc_ref[...] += fold(h)

    @pl.when(s == n_s - 1)
    def _finalize():
        # Single cross-sublane reduce + GAP normalize, once per batch element.
        feat = jnp.sum(acc_ref[...], axis=0, keepdims=True) * inv_hw   # [1, D]
        out = jnp.dot(feat.astype(wp_ref.dtype), wp_ref[...],
                      preferred_element_type=jnp.float32) + bp_ref[...]  # [1, Np]
        o_ref[...] = jnp.broadcast_to(out[:, None, :], o_ref.shape).astype(o_ref.dtype)


# ----------------------------------------------------------------------------
# Single-tile kernel (n_s == 1): whole spatial extent in one block per batch
# element -> no accumulator, no pl.when machinery (toy-shape fast path).
# ----------------------------------------------------------------------------
def fused_kernel_single(p_ref, wc_ref, bc_ref, wp_ref, bp_ref, o_ref,
                        *, hw, tile_hw, inv_hw):
    h = jnp.dot(p_ref[0], wc_ref[...], preferred_element_type=jnp.float32)
    h = jnp.maximum(h + bc_ref[...], 0.0)

    if tile_hw > hw:                      # static: only mask if padded rows exist
        rows = jax.lax.broadcasted_iota(jnp.int32, (tile_hw, 1), 0)
        h = jnp.where(rows < hw, h, 0.0)

    d = h.shape[1]
    part = h.reshape(tile_hw // 8, 8, d).sum(axis=0)        # vreg adds -> [8, D]
    feat = jnp.sum(part, axis=0, keepdims=True) * inv_hw    # one XLU reduce
    out = jnp.dot(feat.astype(wp_ref.dtype), wp_ref[...],
                  preferred_element_type=jnp.float32) + bp_ref[...]      # [1, Np]
    o_ref[...] = jnp.broadcast_to(out[:, None, :], o_ref.shape).astype(o_ref.dtype)


def fused_forward_pallas(patches, w_conv, b_conv, w_proj, b_proj,
                         *, hw, tile_hw):
    """patches: [B, HWp, Kp] bf16 (HWp = n_s * tile_hw, zero padded)."""
    B, HWp, Kp = patches.shape
    D = w_conv.shape[1]
    Np = w_proj.shape[1]
    n_s = HWp // tile_hw
    out_shape = jax.ShapeDtypeStruct((B, 8, Np), jnp.float32)

    if n_s == 1:
        kernel = functools.partial(fused_kernel_single, hw=hw, tile_hw=tile_hw,
                                   inv_hw=1.0 / float(hw))
        return pl.pallas_call(
            kernel,
            out_shape=out_shape,
            grid_spec=pltpu.PrefetchScalarGridSpec(
                num_scalar_prefetch=0,
                grid=(B,),
                in_specs=[
                    pl.BlockSpec((1, tile_hw, Kp), lambda b: (b, 0, 0)),
                    pl.BlockSpec((Kp, D), lambda b: (0, 0)),
                    pl.BlockSpec((1, D), lambda b: (0, 0)),
                    pl.BlockSpec((D, Np), lambda b: (0, 0)),
                    pl.BlockSpec((1, Np), lambda b: (0, 0)),
                ],
                out_specs=pl.BlockSpec((1, 8, Np), lambda b: (b, 0, 0)),
            ),
            compiler_params=pltpu.CompilerParams(
                dimension_semantics=("parallel",),          # v7x dual-TC over B
                vmem_limit_bytes=VMEM_LIMIT_BYTES),
        )(patches, w_conv, b_conv, w_proj, b_proj)

    kernel = functools.partial(fused_kernel, hw=hw, tile_hw=tile_hw,
                               inv_hw=1.0 / float(hw), n_s=n_s)
    return pl.pallas_call(
        kernel,
        out_shape=out_shape,
        grid_spec=pltpu.PrefetchScalarGridSpec(
            num_scalar_prefetch=0,
            grid=(B, n_s),                                  # spatial (reduction) axis last
            in_specs=[
                pl.BlockSpec((1, tile_hw, Kp), lambda b, s: (b, s, 0)),
                pl.BlockSpec((Kp, D), lambda b, s: (0, 0)),
                pl.BlockSpec((1, D), lambda b, s: (0, 0)),
                pl.BlockSpec((D, Np), lambda b, s: (0, 0)),
                pl.BlockSpec((1, Np), lambda b, s: (0, 0)),
            ],
            out_specs=pl.BlockSpec((1, 8, Np), lambda b, s: (b, 0, 0)),
            scratch_shapes=[pltpu.VMEM((8, D), jnp.float32)],
        ),
        compiler_params=pltpu.CompilerParams(
            dimension_semantics=("parallel", "arbitrary"),
            vmem_limit_bytes=VMEM_LIMIT_BYTES),
    )(patches, w_conv, b_conv, w_proj, b_proj)


def model_forward(x_nchw, params):
    """Forward pass matching Model.forward: proj_head(base_model(x))."""
    w_conv, b_conv, w_proj, b_proj = params
    B, C, H, W = x_nchw.shape
    D = w_conv.shape[1]
    N = w_proj.shape[1]
    HW = H * W

    # Glue: NCHW -> NHWC, zero-pad, im2col 3x3 patches (stride 1, pad 1).
    # TODO(synk): replace with in-kernel halo'ed row DMA for resnet-scale inputs.
    x = jnp.transpose(x_nchw, (0, 2, 3, 1))                  # [B, H, W, C]
    xp = jnp.pad(x, ((0, 0), (1, 1), (1, 1), (0, 0)))
    patches = jnp.concatenate(
        [xp[:, i:i + H, j:j + W, :] for i in range(3) for j in range(3)],
        axis=-1,
    )                                                        # [B, H, W, 9*C]
    K = 9 * C
    Kp = _round_up(K, 32)                                    # pad contraction dim
    patches = patches.reshape(B, HW, K)

    # Spatial tiling: large tiles (amortize per-step overhead, feed the MXU a
    # bigger M since K is fixed at 32), multiple of 16 for bf16 sublane packing.
    tile_hw = min(MAX_TILE_HW, _round_up(HW, 16))
    n_s = pl.cdiv(HW, tile_hw)
    HWp = n_s * tile_hw

    patches = jnp.pad(patches, ((0, 0), (0, HWp - HW), (0, Kp - K)))
    patches = patches.astype(jnp.bfloat16)                   # halve DMA bytes
    wc = jnp.pad(w_conv, ((0, Kp - K), (0, 0))).astype(jnp.bfloat16)
    bc = b_conv.astype(jnp.float32)

    Np = _round_up(N, 128)                                   # lane-dense output
    wp = jnp.pad(w_proj, ((0, 0), (0, Np - N))).astype(jnp.bfloat16)
    bp = jnp.pad(b_proj, ((0, 0), (0, Np - N))).astype(jnp.float32)

    out = fused_forward_pallas(patches, wc, bc, wp, bp, hw=HW, tile_hw=tile_hw)
    return out[:, 0, :N]                                     # [B, n_classes]


def init_params(key, c_in=3, h_dim=512, n_classes=1):
    k1, k2, k3, k4 = jax.random.split(key, 4)
    kk = 9 * c_in
    # conv weight laid out as [ki*kj*c_in, h_dim] to match im2col ordering
    w_conv = jax.random.normal(k1, (kk, h_dim), jnp.float32) * (2.0 / kk) ** 0.5
    b_conv = jax.random.normal(k2, (1, h_dim), jnp.float32) * 0.01
    # projection head: nn.Linear(h_dim, n_classes)
    w_proj = jax.random.normal(k3, (h_dim, n_classes), jnp.float32) * (1.0 / h_dim) ** 0.5
    b_proj = jax.random.normal(k4, (1, n_classes), jnp.float32) * 0.01
    return w_conv, b_conv, w_proj, b_proj


if __name__ == "__main__":
    key = jax.random.PRNGKey(0)
    kx, kp = jax.random.split(key)

    B, C, H, W = 2, 3, 16, 16          # small NCHW image batch (RGB)
    h_dim, n_classes = 512, 1          # resnet18 feature dim, default head size

    x = jax.random.normal(kx, (B, C, H, W), jnp.float32)
    params = init_params(kp, c_in=C, h_dim=h_dim, n_classes=n_classes)

    y = jax.jit(model_forward)(x, params)
    y = jax.block_until_ready(y)
    assert y.shape == (B, n_classes), y.shape
    print("KERNEL_OK")
</pallas_src>

<mosaic_0001>
module attributes {stable_mosaic.version = 11 : i64} {
  func.func @fused_kernel_single(%arg0: i32, %arg1: memref<1x256x32xbf16, #tpu.memory_space<vmem>>, %arg2: memref<32x512xbf16, #tpu.memory_space<vmem>>, %arg3: memref<1x512xf32, #tpu.memory_space<vmem>>, %arg4: memref<512x128xbf16, #tpu.memory_space<vmem>>, %arg5: memref<1x128xf32, #tpu.memory_space<vmem>>, %arg6: memref<1x8x128xf32, #tpu.memory_space<vmem>>) attributes {dimension_semantics = [#tpu.dimension_semantics<parallel>], iteration_bounds = array<i64: 2>, scalar_prefetch = 0 : i64, scratch_operands = 0 : i64, tpu.core_type = #tpu.core_type<tc>, window_params = [{transform_indices = @transform_0, window_bounds = array<i64: 1, 256, 32>}, {pipeline_mode = #tpu.pipeline_mode<synchronous>, transform_indices = @transform_1, window_bounds = array<i64: 32, 512>}, {pipeline_mode = #tpu.pipeline_mode<synchronous>, transform_indices = @transform_2, window_bounds = array<i64: 1, 512>}, {pipeline_mode = #tpu.pipeline_mode<synchronous>, transform_indices = @transform_3, window_bounds = array<i64: 512, 128>}, {pipeline_mode = #tpu.pipeline_mode<synchronous>, transform_indices = @transform_4, window_bounds = array<i64: 1, 128>}, {transform_indices = @transform_5, window_bounds = array<i64: 1, 8, 128>}]} {
    %c0 = arith.constant 0 : index
    %c0_0 = arith.constant 0 : index
    %c0_1 = arith.constant 0 : index
    %0 = vector.load %arg1[%c0, %c0_0, %c0_1] : memref<1x256x32xbf16, #tpu.memory_space<vmem>>, vector<1x256x32xbf16>
    %1 = vector.shape_cast %0 : vector<1x256x32xbf16> to vector<256x32xbf16>
    %c0_2 = arith.constant 0 : index
    %c0_3 = arith.constant 0 : index
    %2 = vector.load %arg2[%c0_2, %c0_3] : memref<32x512xbf16, #tpu.memory_space<vmem>>, vector<32x512xbf16>
    %cst = arith.constant dense<0.000000e+00> : vector<256x512xf32>
    %3 = tpu.matmul %1, %2, %cst {dimension_numbers = #tpu.dot_dimension_numbers<[1], [0], [0], [1], [0, 0, 1, 1], [], []>} : vector<256x32xbf16>, vector<32x512xbf16>, vector<256x512xf32> -> vector<256x512xf32>
    %c0_4 = arith.constant 0 : index
    %c0_5 = arith.constant 0 : index
    %4 = vector.load %arg3[%c0_4, %c0_5] : memref<1x512xf32, #tpu.memory_space<vmem>>, vector<1x512xf32>
    %5 = vector.broadcast %4 : vector<1x512xf32> to vector<256x512xf32>
    %6 = arith.addf %3, %5 : vector<256x512xf32>
    %cst_6 = arith.constant 0.000000e+00 : f32
    %7 = vector.broadcast %cst_6 : f32 to vector<256x512xf32>
    %8 = arith.maximumf %6, %7 : vector<256x512xf32>
    %9 = vector.shape_cast %8 : vector<256x512xf32> to vector<32x8x512xf32>
    %cst_7 = arith.constant dense<0.000000e+00> : vector<8x512xf32>
    %10 = vector.multi_reduction <add>, %9, %cst_7 [0] : vector<32x8x512xf32> to vector<8x512xf32>
    %cst_8 = arith.constant dense<0.000000e+00> : vector<512xf32>
    %11 = vector.multi_reduction <add>, %10, %cst_8 [0] : vector<8x512xf32> to vector<512xf32>
    %12 = vector.shape_cast %11 : vector<512xf32> to vector<1x512xf32>
    %cst_9 = arith.constant 3.906250e-03 : f32
    %13 = vector.broadcast %cst_9 : f32 to vector<1x512xf32>
    %14 = arith.mulf %12, %13 : vector<1x512xf32>
    %15 = arith.truncf %14 : vector<1x512xf32> to vector<1x512xbf16>
    %c0_10 = arith.constant 0 : index
    %c0_11 = arith.constant 0 : index
    %16 = vector.load %arg4[%c0_10, %c0_11] : memref<512x128xbf16, #tpu.memory_space<vmem>>, vector<512x128xbf16>
    %cst_12 = arith.constant dense<0.000000e+00> : vector<1x128xf32>
    %17 = tpu.matmul %15, %16, %cst_12 {dimension_numbers = #tpu.dot_dimension_numbers<[1], [0], [0], [1], [0, 0, 1, 1], [], []>} : vector<1x512xbf16>, vector<512x128xbf16>, vector<1x128xf32> -> vector<1x128xf32>
    %c0_13 = arith.constant 0 : index
    %c0_14 = arith.constant 0 : index
    %18 = vector.load %arg5[%c0_13, %c0_14] : memref<1x128xf32, #tpu.memory_space<vmem>>, vector<1x128xf32>
    %19 = arith.addf %17, %18 : vector<1x128xf32>
    %20 = vector.shape_cast %19 : vector<1x128xf32> to vector<1x1x128xf32>
    %21 = vector.shape_cast %20 : vector<1x1x128xf32> to vector<1x1x128xf32>
    %22 = vector.broadcast %21 : vector<1x1x128xf32> to vector<1x8x128xf32>
    %c0_15 = arith.constant 0 : index
    %c0_16 = arith.constant 0 : index
    %c0_17 = arith.constant 0 : index
    %23 = vector.load %arg6[%c0_15, %c0_16, %c0_17] : memref<1x8x128xf32, #tpu.memory_space<vmem>>, vector<1x8x128xf32>
    tpu.vector_store %arg6[%c0_15, %c0_16, %c0_17], %22 {strides = array<i32>} : memref<1x8x128xf32, #tpu.memory_space<vmem>>, vector<1x8x128xf32>,
    return
  }
  func.func @transform_0(%arg0: i32) -> (i32, i32, i32) {
    %c0_i32 = arith.constant 0 : i32
    %c0_i32_0 = arith.constant 0 : i32
    %c0_i32_1 = arith.constant 0 : i32
    return %arg0, %c0_i32, %c0_i32_0 : i32, i32, i32
  }
  func.func @transform_1(%arg0: i32) -> (i32, i32) {
    %c0_i32 = arith.constant 0 : i32
    %c0_i32_0 = arith.constant 0 : i32
    %c0_i32_1 = arith.constant 0 : i32
    return %c0_i32, %c0_i32_0 : i32, i32
  }
  func.func @transform_2(%arg0: i32) -> (i32, i32) {
    %c0_i32 = arith.constant 0 : i32
    %c0_i32_0 = arith.constant 0 : i32
    %c0_i32_1 = arith.constant 0 : i32
    return %c0_i32, %c0_i32_0 : i32, i32
  }
  func.func @transform_3(%arg0: i32) -> (i32, i32) {
    %c0_i32 = arith.constant 0 : i32
    %c0_i32_0 = arith.constant 0 : i32
    %c0_i32_1 = arith.constant 0 : i32
    return %c0_i32, %c0_i32_0 : i32, i32
  }
  func.func @transform_4(%arg0: i32) -> (i32, i32) {
    %c0_i32 = arith.constant 0 : i32
    %c0_i32_0 = arith.constant 0 : i32
    %c0_i32_1 = arith.constant 0 : i32
    return %c0_i32, %c0_i32_0 : i32, i32
  }
  func.func @transform_5(%arg0: i32) -> (i32, i32, i32) {
    %c0_i32 = arith.constant 0 : i32
    %c0_i32_0 = arith.constant 0 : i32
    %c0_i32_1 = arith.constant 0 : i32
    return %arg0, %c0_i32, %c0_i32_0 : i32, i32, i32
  }
}

</mosaic_0001>

<bundles_post_ra>
// kernel: model_forward.1
= control target key start
LH: loop header
LB: loop body
LE: loop exit
PB: predicated region body
PF: predicated region fallthrough
CT: control target
= control target key end

     0   :  { %s1771_s18 = smov 0   ;;  %s2308_s0 = inlined_call_operand.vmem [shape: bf16[2,256,32], index: 0, kind: input, shape index: {}]   ;;  %s2309_s1 = inlined_call_operand.vmem [shape: bf16[32,512], index: 1, kind: input, shape index: {}]   ;;  %s2310_s2 = inlined_call_operand.vmem [shape: f32[1,512], index: 2, kind: input, shape index: {}]   ;;  %s2311_s3 = inlined_call_operand.vmem [shape: bf16[512,128], index: 3, kind: input, shape index: {}]   ;;  %s2312_s4 = inlined_call_operand.vmem [shape: f32[1,128], index: 4, kind: input, shape index: {}]   ;;  %s2313_s5 = inlined_call_operand.vmem [shape: f32[2,8,128], index: 5, kind: output, shape index: {}]  }
   0x1 LB: > { %s1520_s19 = sadd.s32 4294967295, %s1738_s18   ;;  %p1524_p0 = scmp.ge.s32.totalorder %s1738_s18, 1  ;;  %s1738_s18 = sphi %s1771_s18, %s15_s18  }
   0x2   : > { %p187_p1 = scmp.lt.s32.totalorder %s1738_s18, 3 }
   0x4   : > { %p188_p2 = pnand %p1524_p0, %p187_p1 }
   0x5   : > { %p214_p3 = scmp.lt.s32.totalorder (!%p188_p2), %s1520_s19, 1 }
   0x6   : > { %191 = sbr.rel (%p188_p2) target bundleno = 567 (0x237), region = 40 }
   0xb   : > { %v1672_v0 = vld [vmem:[%s2309_s1 + $0x24] ss:$16 sps:$4 sm:$0xff]   ;;  %v1674_v1 = vld [vmem:[%s2309_s1 + $0x2c] ss:$16 sps:$4 sm:$0xff]   ;;  %v1740_v2 = vmov 0   ;;  %s2315_s19 = smov (!%p214_p3, %s1520_s19), 1 }
   0xc   : > { %487 = vmatprep.mubr.bf16.mxu0 %v1740_v2  ;;  %680 = vmatprep.mubr.bf16.mxu1 %v1740_v2  ;;  %v1676_v3 = vld [vmem:[%s2309_s1 + $0x20] ss:$16 sps:$4 sm:$0xff]   ;;  %v1677_v4 = vld [vmem:[%s2309_s1 + $0x28] ss:$16 sps:$4 sm:$0xff]   ;;  %v1678_v5 = vld [vmem:[%s2309_s1 + $0x4] ss:$16 sps:$4 sm:$0xff]  }
   0xd   : > { %467 = vmatprep.subr.bf16.mxu0 %v1672_v0  ;;  %660 = vmatprep.subr.bf16.mxu1 %v1674_v1  ;;  %v1680_v6 = vld [vmem:[%s2309_s1 + $0xc] ss:$16 sps:$4 sm:$0xff]   ;;  %v1682_v7 = vld [vmem:[%s2309_s1] ss:$16 sps:$4 sm:$0xff]   ;;  %s1618_s9 = sshll.u32 %s2315_s19, 7  ;;  %vm406_vm0 = vcmask 261120  }
   0xe   : > { %468 = vmatpush1.bf16.msra.mxu0 %v1676_v3  ;;  %661 = vmatpush1.bf16.msra.mxu1 %v1677_v4  ;;  %v1683_v8 = vld [vmem:[%s2309_s1 + $0x8] ss:$16 sps:$4 sm:$0xff]   ;;  %s1811_s14 = scalar_lea.vmem %s2308_s0, %s1618_s9  ;;  %v1704_v27 = vld [vmem:[%s2311_s3 + $0x70] sm:$0xff]   ;;  %v1712_v37 = vld [vmem:[%s2311_s3 + $0x60] sm:$0xff]  }
   0xf   : > { %469 = vmatprep.subr.bf16.mxu0 %v1678_v5  ;;  %662 = vmatprep.subr.bf16.mxu1 %v1680_v6  ;;  %v1684_v9 = vld [vmem:[%s1811_s14] sm:$0xff]   ;;  %v1685_v10 = vld [vmem:[%s1811_s14 + $0x8] sm:$0xff]   ;;  %v1686_v11 = vld [vmem:[%s1811_s14 + $0x10] sm:$0xff]  }
  0x10   : > { %v1687_v12 = vld [vmem:[%s1811_s14 + $0x18] sm:$0xff]   ;;  %v1688_v13 = vld [vmem:[%s1811_s14 + $0x20] sm:$0xff]   ;;  %v1689_v14 = vld [vmem:[%s1811_s14 + $0x28] sm:$0xff]  }
  0x11   : > { %v1690_v15 = vld [vmem:[%s1811_s14 + $0x30] sm:$0xff]   ;;  %v1691_v16 = vld [vmem:[%s1811_s14 + $0x38] sm:$0xff]   ;;  %v1692_v17 = vld [vmem:[%s1811_s14 + $0x40] sm:$0xff]  }
  0x12   : > { %470 = vmatpush1.bf16.msra.mxu0 %v1682_v7  ;;  %663 = vmatpush1.bf16.msra.mxu1 %v1683_v8  ;;  %v1693_v18 = vld [vmem:[%s1811_s14 + $0x48] sm:$0xff]   ;;  %v1694_v19 = vld [vmem:[%s1811_s14 + $0x50] sm:$0xff]   ;;  %v1695_v20 = vld [vmem:[%s1811_s14 + $0x58] sm:$0xff]  }
  0x13   : > { %v1700_v21 = vld [vmem:[%s2311_s3 + $0x78] sm:$0xff]   ;;  %v1696_v24 = vld [vmem:[%s1811_s14 + $0x60] sm:$0xff]   ;;  %v1697_v26 = vld [vmem:[%s1811_s14 + $0x68] sm:$0xff]  }
  0x14   : > { %v1701_v22 = vld [vmem:[%s2311_s3 + $0x38] sm:$0xff]   ;;  %1619 = vmatprep.subr.bf16.mxu0 %v1700_v21  ;;  %v1698_v28 = vld [vmem:[%s1811_s14 + $0x70] sm:$0xff]   ;;  %v1708_v33 = vld [vmem:[%s2311_s3 + $0x68] sm:$0xff]  }
  0x15   : > { %1552 = vmatmul.mubr.msk.bf16.vlgmr.msra.gmra.mxu0 %vm406_vm0, %v1684_v9  ;;  %1568 = vmatmul.mubr.msk.bf16.vlgmr.msra.gmra.mxu1 %vm406_vm0, %v1684_v9  ;;  %v1702_v23 = vld [vmem:[%s2311_s3 + $0xf8] sm:$0xff]   ;;  %v1705_v29 = vld [vmem:[%s2311_s3 + $0x30] sm:$0xff]   ;;  %v1709_v34 = vld [vmem:[%s2311_s3 + $0x28] sm:$0xff]  }
  0x16   : > { %497 = vmatprep.mubr.bf16.mxu0 %v1740_v2  ;;  %690 = vmatprep.mubr.bf16.mxu1 %v1740_v2  ;;  %v1703_v25 = vld [vmem:[%s2311_s3 + $0xb8] sm:$0xff]   ;;  %v1706_v30 = vld [vmem:[%s2311_s3 + $0xf0] sm:$0xff]   ;;  %v1710_v35 = vld [vmem:[%s2311_s3 + $0xe8] sm:$0xff]  }
  0x17   : > { %1620 = vmatpush3.bf16.msra.mxu0 %v1701_v22  ;;  %1641 = vmatprep.subr.bf16.mxu1 %v1702_v23  ;;  %v1707_v31 = vld [vmem:[%s2311_s3 + $0xb0] sm:$0xff]   ;;  %v1699_v32 = vld [vmem:[%s1811_s14 + $0x78] sm:$0xff]   ;;  %v1711_v36 = vld [vmem:[%s2311_s3 + $0xa8] sm:$0xff]   ;;  %s1527_s14 = sshll.u32 %s2315_s19, 3 }
  0x18   : > { %1642 = vmatpush3.bf16.msra.mxu1 %v1703_v25  ;;  %1621 = vmatprep.subr.bf16.mxu0 %v1704_v27  ;;  %v1713_v38 = vld [vmem:[%s2311_s3 + $0x20] sm:$0xff]   ;;  %v1716_v41 = vld [vmem:[%s2311_s3 + $0x58] sm:$0xff]   ;;  %v1720_v45 = vld [vmem:[%s2311_s3 + $0x50] sm:$0xff]   ;;  %s222_s17 = scalar_lea.vmem %s2313_s5, %s1527_s14 }
  0x19   : > { %1643 = vmatprep.subr.bf16.mxu1 %v1706_v30  ;;  %v1714_v39 = vld [vmem:[%s2311_s3 + $0xe0] sm:$0xff]   ;;  %v1717_v42 = vld [vmem:[%s2311_s3 + $0x18] sm:$0xff]   ;;  %v1721_v46 = vld [vmem:[%s2311_s3 + $0x10] sm:$0xff]  }
  0x1a   : > { %v1715_v40 = vld [vmem:[%s2311_s3 + $0xa0] sm:$0xff]   ;;  %v1718_v43 = vld [vmem:[%s2311_s3 + $0xd8] sm:$0xff]   ;;  %v1722_v47 = vld [vmem:[%s2311_s3 + $0xd0] sm:$0xff]  }
  0x1b   : > { %1622 = vmatpush3.bf16.msra.mxu0 %v1705_v29  ;;  %v1719_v44 = vld [vmem:[%s2311_s3 + $0x98] sm:$0xff]   ;;  %v1723_v48 = vld [vmem:[%s2311_s3 + $0x90] sm:$0xff]   ;;  %v1724_v49 = vld [vmem:[%s2311_s3 + $0x48] sm:$0xff]  }
  0x1c   : > { %1644 = vmatpush3.bf16.msra.mxu1 %v1707_v31  ;;  %1623 = vmatprep.subr.bf16.mxu0 %v1708_v33  ;;  %v1725_v50 = vld [vmem:[%s2311_s3 + $0x8] sm:$0xff]   ;;  %v1728_v7 = vld [vmem:[%s2311_s3 + $0x40] sm:$0xff]  }
  0x1d   : > { %1553 = vmatmul.mubr.msk.bf16.gmra.mxu0 %vm406_vm0, %v1685_v10  ;;  %1569 = vmatmul.mubr.msk.bf16.gmra.mxu1 %vm406_vm0, %v1685_v10  ;;  %v1726_v51 = vld [vmem:[%s2311_s3 + $0xc8] sm:$0xff]   ;;  %v1729_v8 = vld [vmem:[%s2311_s3] sm:$0xff]   ;;  %v266_v10 = vlaneseq }
  0x1e   : > { %507 = vmatprep.mubr.bf16.mxu0 %v1740_v2  ;;  %700 = vmatprep.mubr.bf16.mxu1 %v1740_v2  ;;  %v1727_v52 = vld [vmem:[%s2311_s3 + $0x88] sm:$0xff]   ;;  %v1730_v9 = vld [vmem:[%s2311_s3 + $0xc0] sm:$0xff]  }
  0x1f   : > { %1624 = vmatpush3.bf16.msra.mxu0 %v1709_v34  ;;  %1645 = vmatprep.subr.bf16.mxu1 %v1710_v35  ;;  %v264_v25 = vld [vmem:[%s2310_s2] sm:$0xf] }
  0x20   : > { %1646 = vmatpush3.bf16.msra.mxu1 %v1711_v36  ;;  %1625 = vmatprep.subr.bf16.mxu0 %v1712_v37 }
  0x21   : > { %1647 = vmatprep.subr.bf16.mxu1 %v1714_v39 }
  0x23   : > { %1626 = vmatpush3.bf16.msra.mxu0 %v1713_v38 }
  0x24   : > { %1648 = vmatpush3.bf16.msra.mxu1 %v1715_v40  ;;  %1627 = vmatprep.subr.bf16.mxu0 %v1716_v41 }
  0x25   : > { %1554 = vmatmul.mubr.msk.bf16.gmra.mxu0 %vm406_vm0, %v1686_v11  ;;  %1570 = vmatmul.mubr.msk.bf16.gmra.mxu1 %vm406_vm0, %v1686_v11 }
  0x26   : > { %517 = vmatprep.mubr.bf16.mxu0 %v1740_v2  ;;  %710 = vmatprep.mubr.bf16.mxu1 %v1740_v2 }
  0x27   : > { %1628 = vmatpush3.bf16.msra.mxu0 %v1717_v42  ;;  %1649 = vmatprep.subr.bf16.mxu1 %v1718_v43 }
  0x28   : > { %1650 = vmatpush3.bf16.msra.mxu1 %v1719_v44  ;;  %1629 = vmatprep.subr.bf16.mxu0 %v1720_v45 }
  0x29   : > { %1651 = vmatprep.subr.bf16.mxu1 %v1722_v47 }
  0x2b   : > { %1630 = vmatpush3.bf16.msra.mxu0 %v1721_v46 }
  0x2c   : > { %1652 = vmatpush3.bf16.msra.mxu1 %v1723_v48  ;;  %1631 = vmatprep.subr.bf16.mxu0 %v1724_v49 }
  0x2d   : > { %1555 = vmatmul.mubr.msk.bf16.gmra.mxu0 %vm406_vm0, %v1687_v12  ;;  %1571 = vmatmul.mubr.msk.bf16.gmra.mxu1 %vm406_vm0, %v1687_v12 }
  0x2e   : > { %527 = vmatprep.mubr.bf16.mxu0 %v1740_v2  ;;  %720 = vmatprep.mubr.bf16.mxu1 %v1740_v2 }
  0x2f   : > { %1632 = vmatpush3.bf16.msra.mxu0 %v1725_v50  ;;  %1653 = vmatprep.subr.bf16.mxu1 %v1726_v51 }
  0x30   : > { %1654 = vmatpush3.bf16.msra.mxu1 %v1727_v52  ;;  %1633 = vmatprep.subr.bf16.mxu0 %v1728_v7 }
  0x31   : > { %1655 = vmatprep.subr.bf16.mxu1 %v1730_v9 }
  0x33   : > { %1634 = vmatpush3.bf16.msra.mxu0 %v1729_v8 }
  0x35   : > { %1556 = vmatmul.mubr.msk.bf16.gmra.mxu0 %vm406_vm0, %v1688_v13  ;;  %1572 = vmatmul.mubr.msk.bf16.gmra.mxu1 %vm406_vm0, %v1688_v13  ;;  %v1731_v13 = vld [vmem:[%s2311_s3 + $0x80] sm:$0xff]  }
  0x36   : > { %537 = vmatprep.mubr.bf16.mxu0 %v1740_v2  ;;  %730 = vmatprep.mubr.bf16.mxu1 %v1740_v2 }
  0x37   : > { %1656 = vmatpush3.bf16.msra.mxu1 %v1731_v13 }
  0x3d   : > { %1557 = vmatmul.mubr.msk.bf16.gmra.mxu0 %vm406_vm0, %v1689_v14  ;;  %1573 = vmatmul.mubr.msk.bf16.gmra.mxu1 %vm406_vm0, %v1689_v14 }
  0x3e   : > { %547 = vmatprep.mubr.bf16.mxu0 %v1740_v2  ;;  %740 = vmatprep.mubr.bf16.mxu1 %v1740_v2 }
  0x45   : > { %1558 = vmatmul.mubr.msk.bf16.gmra.mxu0 %vm406_vm0, %v1690_v15  ;;  %1574 = vmatmul.mubr.msk.bf16.gmra.mxu1 %vm406_vm0, %v1690_v15 }
  0x46   : > { %557 = vmatprep.mubr.bf16.mxu0 %v1740_v2  ;;  %750 = vmatprep.mubr.bf16.mxu1 %v1740_v2 }
  0x4d   : > { %1559 = vmatmul.mubr.msk.bf16.gmra.mxu0 %vm406_vm0, %v1691_v16  ;;  %1575 = vmatmul.mubr.msk.bf16.gmra.mxu1 %vm406_vm0, %v1691_v16  ;;  %v2003_v16 = vshrl.u32 %v266_v10, 7 }
  0x4e   : > { %567 = vmatprep.mubr.bf16.mxu0 %v1740_v2  ;;  %760 = vmatprep.mubr.bf16.mxu1 %v1740_v2 }
  0x4f   : > { %v268_v21 = vsub.s32 0, %v2003_v16  ;;  %v276_v22 = vsub.s32 2, %v2003_v16  ;;  %v280_v27 = vsub.s32 3, %v2003_v16 }
  0x51   : > { %v2030_v30 = vrot.slane %v264_v25, %v268_v21  ;;  %v2032_v31 = vrot.slane %v264_v25, %v276_v22  ;;  %v2040_v35 = vrot.slane %v264_v25, %v280_v27 }
  0x55   : > { %1560 = vmatmul.mubr.msk.bf16.gmra.mxu0 %vm406_vm0, %v1692_v17  ;;  %1576 = vmatmul.mubr.msk.bf16.gmra.mxu1 %vm406_vm0, %v1692_v17 }
  0x56   : > { %577 = vmatprep.mubr.bf16.mxu0 %v1740_v2  ;;  %770 = vmatprep.mubr.bf16.mxu1 %v1740_v2 }
  0x5d   : > { %1561 = vmatmul.mubr.msk.bf16.gmra.mxu0 %vm406_vm0, %v1693_v18  ;;  %1577 = vmatmul.mubr.msk.bf16.gmra.mxu1 %vm406_vm0, %v1693_v18 }
  0x5e   : > { %587 = vmatprep.mubr.bf16.mxu0 %v1740_v2  ;;  %780 = vmatprep.mubr.bf16.mxu1 %v1740_v2 }
  0x65   : > { %1562 = vmatmul.mubr.msk.bf16.gmra.mxu0 %vm406_vm0, %v1694_v19  ;;  %1578 = vmatmul.mubr.msk.bf16.gmra.mxu1 %vm406_vm0, %v1694_v19 }
  0x66   : > { %597 = vmatprep.mubr.bf16.mxu0 %v1740_v2  ;;  %790 = vmatprep.mubr.bf16.mxu1 %v1740_v2 }
  0x6d   : > { %1563 = vmatmul.mubr.msk.bf16.gmra.mxu0 %vm406_vm0, %v1695_v20  ;;  %1579 = vmatmul.mubr.msk.bf16.gmra.mxu1 %vm406_vm0, %v1695_v20 }
  0x6e   : > { %607 = vmatprep.mubr.bf16.mxu0 %v1740_v2  ;;  %800 = vmatprep.mubr.bf16.mxu1 %v1740_v2 }
  0x75   : > { %1564 = vmatmul.mubr.msk.bf16.gmra.mxu0 %vm406_vm0, %v1696_v24  ;;  %1580 = vmatmul.mubr.msk.bf16.gmra.mxu1 %vm406_vm0, %v1696_v24 }
  0x76   : > { %617 = vmatprep.mubr.bf16.mxu0 %v1740_v2  ;;  %810 = vmatprep.mubr.bf16.mxu1 %v1740_v2 }
  0x7d   : > { %1565 = vmatmul.mubr.msk.bf16.gmra.mxu0 %vm406_vm0, %v1697_v26  ;;  %1581 = vmatmul.mubr.msk.bf16.gmra.mxu1 %vm406_vm0, %v1697_v26  ;;  %v272_v26 = vsub.s32 1, %v2003_v16 }
  0x7e   : > { %627 = vmatprep.mubr.bf16.mxu0 %v1740_v2  ;;  %820 = vmatprep.mubr.bf16.mxu1 %v1740_v2 }
  0x7f   : > { %v2038_v34 = vrot.slane %v264_v25, %v272_v26 }
  0x85   : > { %1566 = vmatmul.mubr.msk.bf16.gmra.mxu0 %vm406_vm0, %v1698_v28  ;;  %1582 = vmatmul.mubr.msk.bf16.gmra.mxu1 %vm406_vm0, %v1698_v28 }
  0x86   : > { %637 = vmatprep.mubr.bf16.mxu0 %v1740_v2  ;;  %830 = vmatprep.mubr.bf16.mxu1 %v1740_v2 }
  0x8d   : > { %1567 = vmatmul.mubr.msk.bf16.gmra.mxu0 %vm406_vm0, %v1699_v32  ;;  %1583 = vmatmul.mubr.msk.bf16.gmra.mxu1 %vm406_vm0, %v1699_v32 }
  0xd5   : > { %v489_v53 = vpop.f32.mrf.mxu0  ;;  %v682_v54 = vpop.f32.mrf.mxu1 }
  0xd6   : > { %v490_v40 = vadd.f32 %v489_v53, %v2030_v30  ;;  %v683_v41 = vadd.f32 %v682_v54, %v2032_v31 }
  0xd7   : > { %v491_v55 = vpop.f32.mrf.mxu0  ;;  %v684_v56 = vpop.f32.mrf.mxu1 }
  0xd8   : > { %v492_v46 = vadd.f32 %v491_v55, %v2038_v34  ;;  %v685_v47 = vadd.f32 %v684_v56, %v2040_v35  ;;  %v843_v56 = vmax.f32 %v683_v41, 0.0 }
  0xd9   : > { %v493_v57 = vpop.f32.mrf.mxu0  ;;  %v686_v58 = vpop.f32.mrf.mxu1 }
  0xda   : > { %v494_v36 = vadd.f32 %v493_v57, %v2030_v30  ;;  %v687_v37 = vadd.f32 %v686_v58, %v2032_v31  ;;  %v842_v8 = vmax.f32 %v492_v46, 0.0  ;;  %v844_v9 = vmax.f32 %v685_v47, 0.0 }
  0xdb   : > { %v495_v59 = vpop.f32.mrf.mxu0  ;;  %v688_v60 = vpop.f32.mrf.mxu1 }
  0xdc   : > { %v496_v42 = vadd.f32 %v495_v59, %v2038_v34  ;;  %v689_v43 = vadd.f32 %v688_v60, %v2040_v35  ;;  %v845_v50 = vmax.f32 %v494_v36, 0.0  ;;  %v847_v51 = vmax.f32 %v687_v37, 0.0 }
  0xdd   : > { %v499_v61 = vpop.f32.mrf.mxu0  ;;  %v692_v62 = vpop.f32.mrf.mxu1  ;;  %v841_v59 = vmax.f32 %v490_v40, 0.0 }
  0xde   : > { %v500_v48 = vadd.f32 %v499_v61, %v2030_v30  ;;  %v693_v49 = vadd.f32 %v692_v62, %v2032_v31  ;;  %v846_v60 = vmax.f32 %v496_v42, 0.0  ;;  %v848_v61 = vmax.f32 %v689_v43, 0.0 }
  0xdf   : > { %v501_v63 = vpop.f32.mrf.mxu0  ;;  %v694_v0 = vpop.f32.mrf.mxu1  ;;  %v969_v22 = vadd.f32 %v845_v50, %v841_v59 }
  0xe0   : > { %v502_v54 = vadd.f32 %v501_v63, %v2038_v34  ;;  %v695_v57 = vadd.f32 %v694_v0, %v2040_v35  ;;  %v849_v10 = vmax.f32 %v500_v48, 0.0  ;;  %v851_v13 = vmax.f32 %v693_v49, 0.0 }
  0xe1   : > { %v503_v1 = vpop.f32.mrf.mxu0  ;;  %v696_v2 = vpop.f32.mrf.mxu1  ;;  %v1031_v63 = vadd.f32 %v847_v51, %v843_v56  ;;  %v1000_v40 = vadd.f32 %v846_v60, %v842_v8  ;;  %v1062_v41 = vadd.f32 %v848_v61, %v844_v9 }
  0xe2   : > { %v504_v58 = vadd.f32 %v503_v1, %v2030_v30  ;;  %v697_v55 = vadd.f32 %v696_v2, %v2032_v31  ;;  %v850_v26 = vmax.f32 %v502_v54, 0.0  ;;  %v852_v27 = vmax.f32 %v695_v57, 0.0 }
  0xe3   : > { %v1975_v3 = vpop.f32.mrf.mxu0  ;;  %v1977_v4 = vpop.f32.mrf.mxu1  ;;  %v1032_v47 = vadd.f32 %v1031_v63, %v851_v13 }
  0xe4   : > { %v506_v0 = vadd.f32 %v1975_v3, %v2038_v34  ;;  %v699_v1 = vadd.f32 %v1977_v4, %v2040_v35  ;;  %v853_v36 = vmax.f32 %v504_v58, 0.0  ;;  %v855_v37 = vmax.f32 %v697_v55, 0.0 }
  0xe5   : > { %v1979_v5 = vpop.f32.mrf.mxu0  ;;  %v1981_v6 = vpop.f32.mrf.mxu1  ;;  %v970_v4 = vadd.f32 %v969_v22, %v849_v10  ;;  %v1001_v58 = vadd.f32 %v1000_v40, %v850_v26  ;;  %v1063_v55 = vadd.f32 %v1062_v41, %v852_v27 }
  0xe6   : > { %v510_v42 = vadd.f32 %v1979_v5, %v2030_v30  ;;  %v703_v43 = vadd.f32 %v1981_v6, %v2032_v31  ;;  %v854_v50 = vmax.f32 %v506_v0, 0.0  ;;  %v856_v51 = vmax.f32 %v699_v1, 0.0 }
  0xe7   : > { %v1992_v11 = vpop.f32.mrf.mxu0  ;;  %v1994_v12 = vpop.f32.mrf.mxu1  ;;  %v971_v59 = vadd.f32 %v970_v4, %v853_v36  ;;  %v1033_v56 = vadd.f32 %v1032_v47, %v855_v37 }
  0xe8   : > { %v512_v48 = vadd.f32 %v1992_v11, %v2038_v34  ;;  %v705_v49 = vadd.f32 %v1994_v12, %v2040_v35  ;;  %v857_v11 = vmax.f32 %v510_v42, 0.0  ;;  %v859_v60 = vmax.f32 %v703_v43, 0.0 }
  0xe9   : > { %v1999_v14 = vpop.f32.mrf.mxu0  ;;  %v2001_v15 = vpop.f32.mrf.mxu1  ;;  %v1002_v22 = vadd.f32 %v1001_v58, %v854_v50  ;;  %v1064_v63 = vadd.f32 %v1063_v55, %v856_v51 }
  0xea   : > { %v514_v5 = vadd.f32 %v1999_v14, %v2030_v30  ;;  %v707_v6 = vadd.f32 %v2001_v15, %v2032_v31  ;;  %v858_v15 = vmax.f32 %v512_v48, 0.0  ;;  %v860_v9 = vmax.f32 %v705_v49, 0.0 }
  0xeb   : > { %v2005_v17 = vpop.f32.mrf.mxu0  ;;  %v2007_v18 = vpop.f32.mrf.mxu1  ;;  %v972_v36 = vadd.f32 %v971_v59, %v857_v11  ;;  %v1034_v37 = vadd.f32 %v1033_v56, %v859_v60 }
  0xec   : > { %v516_v12 = vadd.f32 %v2005_v17, %v2038_v34  ;;  %v709_v61 = vadd.f32 %v2007_v18, %v2040_v35  ;;  %v861_v0 = vmax.f32 %v514_v5, 0.0  ;;  %v863_v1 = vmax.f32 %v707_v6, 0.0 }
  0xed   : > { %v2009_v19 = vpop.f32.mrf.mxu0  ;;  %v2011_v20 = vpop.f32.mrf.mxu1  ;;  %v1003_v4 = vadd.f32 %v1002_v22, %v858_v15  ;;  %v1065_v47 = vadd.f32 %v1064_v63, %v860_v9 }
  0xee   : > { %v520_v10 = vadd.f32 %v2009_v19, %v2030_v30  ;;  %v713_v13 = vadd.f32 %v2011_v20, %v2032_v31  ;;  %v862_v40 = vmax.f32 %v516_v12, 0.0  ;;  %v864_v41 = vmax.f32 %v709_v61, 0.0 }
  0xef   : > { %v2015_v23 = vpop.f32.mrf.mxu0  ;;  %v2017_v24 = vpop.f32.mrf.mxu1  ;;  %v973_v49 = vadd.f32 %v972_v36, %v861_v0 }
  0xf0   : > { %v522_v18 = vadd.f32 %v2015_v23, %v2038_v34  ;;  %v715_v27 = vadd.f32 %v2017_v24, %v2040_v35  ;;  %v865_v23 = vmax.f32 %v520_v10, 0.0  ;;  %v867_v48 = vmax.f32 %v713_v13, 0.0 }
  0xf1   : > { %v2024_v28 = vpop.f32.mrf.mxu0  ;;  %v2026_v29 = vpop.f32.mrf.mxu1  ;;  %v1035_v24 = vadd.f32 %v1034_v37, %v863_v1  ;;  %v1004_v59 = vadd.f32 %v1003_v4, %v862_v40  ;;  %v1066_v56 = vadd.f32 %v1065_v47, %v864_v41 }
  0xf2   : > { %v524_v19 = vadd.f32 %v2024_v28, %v2030_v30  ;;  %v717_v20 = vadd.f32 %v2026_v29, %v2032_v31  ;;  %v866_v5 = vmax.f32 %v522_v18, 0.0  ;;  %v868_v6 = vmax.f32 %v715_v27, 0.0 }
  0xf3   : > { %v2034_v32 = vpop.f32.mrf.mxu0  ;;  %v2036_v33 = vpop.f32.mrf.mxu1  ;;  %v1036_v61 = vadd.f32 %v1035_v24, %v867_v48 }
  0xf4   : > { %v526_v28 = vadd.f32 %v2034_v32, %v2038_v34  ;;  %v719_v29 = vadd.f32 %v2036_v33, %v2040_v35  ;;  %v869_v58 = vmax.f32 %v524_v19, 0.0  ;;  %v871_v55 = vmax.f32 %v717_v20, 0.0 }
  0xf5   : > { %v2044_v38 = vpop.f32.mrf.mxu0  ;;  %v2046_v39 = vpop.f32.mrf.mxu1  ;;  %v974_v33 = vadd.f32 %v973_v49, %v865_v23  ;;  %v1005_v0 = vadd.f32 %v1004_v59, %v866_v5  ;;  %v1067_v1 = vadd.f32 %v1066_v56, %v868_v6 }
  0xf6   : > { %v530_v11 = vadd.f32 %v2044_v38, %v2030_v30  ;;  %v723_v60 = vadd.f32 %v2046_v39, %v2032_v31  ;;  %v870_v10 = vmax.f32 %v526_v28, 0.0  ;;  %v872_v13 = vmax.f32 %v719_v29, 0.0 }
  0xf7   : > { %v2052_v44 = vpop.f32.mrf.mxu0  ;;  %v2054_v45 = vpop.f32.mrf.mxu1  ;;  %v975_v18 = vadd.f32 %v974_v33, %v869_v58  ;;  %v1037_v27 = vadd.f32 %v1036_v61, %v871_v55 }
  0xf8   : > { %v532_v15 = vadd.f32 %v2052_v44, %v2038_v34  ;;  %v725_v9 = vadd.f32 %v2054_v45, %v2040_v35  ;;  %v873_v44 = vmax.f32 %v530_v11, 0.0  ;;  %v875_v19 = vmax.f32 %v723_v60, 0.0 }
  0xf9   : > { %v2060_v52 = vpop.f32.mrf.mxu0  ;;  %v2062_v53 = vpop.f32.mrf.mxu1  ;;  %v1006_v4 = vadd.f32 %v1005_v0, %v870_v10  ;;  %v1068_v47 = vadd.f32 %v1067_v1, %v872_v13 }
  0xfa   : > { %v534_v38 = vadd.f32 %v2060_v52, %v2030_v30  ;;  %v727_v39 = vadd.f32 %v2062_v53, %v2032_v31  ;;  %v874_v53 = vmax.f32 %v532_v15, 0.0  ;;  %v876_v37 = vmax.f32 %v725_v9, 0.0 }
  0xfb   : > { %v2068_v7 = vpop.f32.mrf.mxu0  ;;  %v2070_v62 = vpop.f32.mrf.mxu1  ;;  %v976_v28 = vadd.f32 %v975_v18, %v873_v44  ;;  %v1038_v29 = vadd.f32 %v1037_v27, %v875_v19 }
  0xfc   : > { %v536_v45 = vadd.f32 %v2068_v7, %v2038_v34  ;;  %v729_v20 = vadd.f32 %v2070_v62, %v2040_v35  ;;  %v877_v23 = vmax.f32 %v534_v38, 0.0  ;;  %v879_v48 = vmax.f32 %v727_v39, 0.0 }
  0xfd   : > { %v2076_v2 = vpop.f32.mrf.mxu0  ;;  %v2078_v25 = vpop.f32.mrf.mxu1  ;;  %v1007_v59 = vadd.f32 %v1006_v4, %v874_v53  ;;  %v1069_v56 = vadd.f32 %v1068_v47, %v876_v37 }
  0xfe   : > { %v540_v40 = vadd.f32 %v2076_v2, %v2030_v30  ;;  %v733_v41 = vadd.f32 %v2078_v25, %v2032_v31  ;;  %v878_v5 = vmax.f32 %v536_v45, 0.0  ;;  %v880_v6 = vmax.f32 %v729_v20, 0.0 }
  0xff   : > { %v2084_v3 = vpop.f32.mrf.mxu0  ;;  %v2086_v46 = vpop.f32.mrf.mxu1  ;;  %v977_v60 = vadd.f32 %v976_v28, %v877_v23 }
 0x100   : > { %v542_v62 = vadd.f32 %v2084_v3, %v2038_v34  ;;  %v735_v24 = vadd.f32 %v2086_v46, %v2040_v35  ;;  %v881_v3 = vmax.f32 %v540_v40, 0.0  ;;  %v883_v11 = vmax.f32 %v733_v41, 0.0 }
 0x101   : > { %v2096_v54 = vpop.f32.mrf.mxu0  ;;  %v2098_v57 = vpop.f32.mrf.mxu1  ;;  %v1039_v46 = vadd.f32 %v1038_v29, %v879_v48  ;;  %v1008_v38 = vadd.f32 %v1007_v59, %v878_v5  ;;  %v1070_v39 = vadd.f32 %v1069_v56, %v880_v6 }
 0x102   : > { %v544_v2 = vadd.f32 %v2096_v54, %v2030_v30  ;;  %v737_v25 = vadd.f32 %v2098_v57, %v2032_v31  ;;  %v882_v15 = vmax.f32 %v542_v62, 0.0  ;;  %v884_v9 = vmax.f32 %v735_v24, 0.0 }
 0x103   : > { %v2104_v14 = vpop.f32.mrf.mxu0  ;;  %v2106_v8 = vpop.f32.mrf.mxu1  ;;  %v1040_v27 = vadd.f32 %v1039_v46, %v883_v11 }
 0x104   : > { %v546_v54 = vadd.f32 %v2104_v14, %v2038_v34  ;;  %v739_v57 = vadd.f32 %v2106_v8, %v2040_v35  ;;  %v885_v10 = vmax.f32 %v544_v2, 0.0  ;;  %v887_v13 = vmax.f32 %v737_v25, 0.0 }
 0x105   : > { %v2112_v17 = vpop.f32.mrf.mxu0  ;;  %v2114_v26 = vpop.f32.mrf.mxu1  ;;  %v978_v8 = vadd.f32 %v977_v60, %v881_v3  ;;  %v1009_v40 = vadd.f32 %v1008_v38, %v882_v15  ;;  %v1071_v41 = vadd.f32 %v1070_v39, %v884_v9 }
 0x106   : > { %v550_v0 = vadd.f32 %v2112_v17, %v2030_v30  ;;  %v743_v1 = vadd.f32 %v2114_v26, %v2032_v31  ;;  %v886_v45 = vmax.f32 %v546_v54, 0.0  ;;  %v888_v20 = vmax.f32 %v739_v57, 0.0 }
 0x107   : > { %v2124_v42 = vpop.f32.mrf.mxu0  ;;  %v2126_v43 = vpop.f32.mrf.mxu1  ;;  %v979_v4 = vadd.f32 %v978_v8, %v885_v10  ;;  %v1041_v47 = vadd.f32 %v1040_v27, %v887_v13 }
 0x108   : > { %v552_v44 = vadd.f32 %v2124_v42, %v2038_v34  ;;  %v745_v19 = vadd.f32 %v2126_v43, %v2040_v35  ;;  %v889_v23 = vmax.f32 %v550_v0, 0.0  ;;  %v891_v48 = vmax.f32 %v743_v1, 0.0 }
 0x109   : > { %v2132_v50 = vpop.f32.mrf.mxu0  ;;  %v2134_v51 = vpop.f32.mrf.mxu1  ;;  %v1010_v28 = vadd.f32 %v1009_v40, %v886_v45  ;;  %v1072_v29 = vadd.f32 %v1071_v41, %v888_v20 }
 0x10a   : > { %v554_v17 = vadd.f32 %v2132_v50, %v2030_v30  ;;  %v747_v26 = vadd.f32 %v2134_v51, %v2032_v31  ;;  %v890_v50 = vmax.f32 %v552_v44, 0.0  ;;  %v892_v2 = vmax.f32 %v745_v19, 0.0 }
 0x10b   : > { %v2140_v32 = vpop.f32.mrf.mxu0  ;;  %v2142_v12 = vpop.f32.mrf.mxu1  ;;  %v980_v11 = vadd.f32 %v979_v4, %v889_v23 }
 0x10c   : > { %v556_v42 = vadd.f32 %v2140_v32, %v2038_v34  ;;  %v749_v43 = vadd.f32 %v2142_v12, %v2040_v35  ;;  %v893_v5 = vmax.f32 %v554_v17, 0.0  ;;  %v895_v6 = vmax.f32 %v747_v26, 0.0 }
 0x10d   : > { %v2152_v22 = vpop.f32.mrf.mxu0  ;;  %v2154_v63 = vpop.f32.mrf.mxu1  ;;  %v1011_v15 = vadd.f32 %v1010_v28, %v890_v50  ;;  %v1073_v9 = vadd.f32 %v1072_v29, %v892_v2 }
 0x10e   : > { %v560_v51 = vadd.f32 %v2152_v22, %v2030_v30  ;;  %v753_v25 = vadd.f32 %v2154_v63, %v2032_v31  ;;  %v1042_v63 = vadd.f32 %v1041_v47, %v891_v48  ;;  %v894_v60 = vmax.f32 %v556_v42, 0.0 }
 0x10f   : > { %v2160_v52 = vpop.f32.mrf.mxu0  ;;  %v2162_v36 = vpop.f32.mrf.mxu1  ;;  %v896_v46 = vmax.f32 %v749_v43, 0.0 }
 0x110   : > { %v562_v32 = vadd.f32 %v2160_v52, %v2038_v34  ;;  %v755_v12 = vadd.f32 %v2162_v36, %v2040_v35  ;;  %v897_v10 = vmax.f32 %v560_v51, 0.0  ;;  %v899_v13 = vmax.f32 %v753_v25, 0.0 }
 0x111   : > { %v2168_v7 = vpop.f32.mrf.mxu0  ;;  %v2170_v49 = vpop.f32.mrf.mxu1  ;;  %v981_v52 = vadd.f32 %v980_v11, %v893_v5  ;;  %v1043_v38 = vadd.f32 %v1042_v63, %v895_v6  ;;  %v1012_v44 = vadd.f32 %v1011_v15, %v894_v60  ;;  %v1074_v19 = vadd.f32 %v1073_v9, %v896_v46 }
 0x112   : > { %v564_v3 = vadd.f32 %v2168_v7, %v2030_v30  ;;  %v757_v22 = vadd.f32 %v2170_v49, %v2032_v31  ;;  %v898_v0 = vmax.f32 %v562_v32, 0.0  ;;  %v900_v1 = vmax.f32 %v755_v12, 0.0 }
 0x113   : > { %v2180_v58 = vpop.f32.mrf.mxu0  ;;  %v2182_v55 = vpop.f32.mrf.mxu1  ;;  %v1044_v40 = vadd.f32 %v1043_v38, %v899_v13 }
 0x114   : > { %v566_v36 = vadd.f32 %v2180_v58, %v2038_v34  ;;  %v759_v7 = vadd.f32 %v2182_v55, %v2040_v35  ;;  %v901_v8 = vmax.f32 %v564_v3, 0.0  ;;  %v903_v27 = vmax.f32 %v757_v22, 0.0 }
 0x115   : > { %v2188_v33 = vpop.f32.mrf.mxu0  ;;  %v2190_v61 = vpop.f32.mrf.mxu1  ;;  %v982_v58 = vadd.f32 %v981_v52, %v897_v10  ;;  %v1013_v43 = vadd.f32 %v1012_v44, %v898_v0 }
 0x116   : > { %v570_v45 = vadd.f32 %v2188_v33, %v2030_v30  ;;  %v763_v20 = vadd.f32 %v2190_v61, %v2032_v31  ;;  %v902_v4 = vmax.f32 %v566_v36, 0.0  ;;  %v904_v47 = vmax.f32 %v759_v7, 0.0 }
 0x117   : > { %v2196_v14 = vpop.f32.mrf.mxu0  ;;  %v2198_v18 = vpop.f32.mrf.mxu1  ;;  %v1075_v61 = vadd.f32 %v1074_v19, %v900_v1  ;;  %v983_v50 = vadd.f32 %v982_v58, %v901_v8  ;;  %v1045_v2 = vadd.f32 %v1044_v40, %v903_v27 }
 0x118   : > { %v572_v55 = vadd.f32 %v2196_v14, %v2038_v34  ;;  %v765_v41 = vadd.f32 %v2198_v18, %v2040_v35  ;;  %v905_v51 = vmax.f32 %v570_v45, 0.0  ;;  %v907_v25 = vmax.f32 %v763_v20, 0.0 }
 0x119   : > { %v573_v53 = vpop.f32.mrf.mxu0  ;;  %v766_v37 = vpop.f32.mrf.mxu1  ;;  %v1014_v32 = vadd.f32 %v1013_v43, %v902_v4  ;;  %v1076_v12 = vadd.f32 %v1075_v61, %v904_v47 }
 0x11a   : > { %v574_v23 = vadd.f32 %v573_v53, %v2030_v30  ;;  %v767_v48 = vadd.f32 %v766_v37, %v2032_v31  ;;  %v906_v5 = vmax.f32 %v572_v55, 0.0  ;;  %v908_v6 = vmax.f32 %v765_v41, 0.0 }
 0x11b   : > { %v575_v62 = vpop.f32.mrf.mxu0  ;;  %v768_v24 = vpop.f32.mrf.mxu1  ;;  %v984_v15 = vadd.f32 %v983_v50, %v905_v51  ;;  %v1046_v9 = vadd.f32 %v1045_v2, %v907_v25 }
 0x11c   : > { %v576_v28 = vadd.f32 %v575_v62, %v2038_v34  ;;  %v769_v14 = vadd.f32 %v768_v24, %v2040_v35  ;;  %v909_v3 = vmax.f32 %v574_v23, 0.0  ;;  %v911_v22 = vmax.f32 %v767_v48, 0.0 }
 0x11d   : > { %v579_v59 = vpop.f32.mrf.mxu0  ;;  %v772_v56 = vpop.f32.mrf.mxu1  ;;  %v1015_v52 = vadd.f32 %v1014_v32, %v906_v5  ;;  %v1077_v38 = vadd.f32 %v1076_v12, %v908_v6 }
 0x11e   : > { %v580_v53 = vadd.f32 %v579_v59, %v2030_v30  ;;  %v773_v37 = vadd.f32 %v772_v56, %v2032_v31  ;;  %v910_v10 = vmax.f32 %v576_v28, 0.0  ;;  %v912_v59 = vmax.f32 %v769_v14, 0.0 }
 0x11f   : > { %v581_v54 = vpop.f32.mrf.mxu0  ;;  %v774_v57 = vpop.f32.mrf.mxu1  ;;  %v985_v0 = vadd.f32 %v984_v15, %v909_v3  ;;  %v1047_v1 = vadd.f32 %v1046_v9, %v911_v22 }
 0x120   : > { %v582_v60 = vadd.f32 %v581_v54, %v2038_v34  ;;  %v775_v62 = vadd.f32 %v774_v57, %v2040_v35  ;;  %v913_v36 = vmax.f32 %v580_v53, 0.0  ;;  %v915_v7 = vmax.f32 %v773_v37, 0.0 }
 0x121   : > { %v583_v39 = vpop.f32.mrf.mxu0  ;;  %v776_v49 = vpop.f32.mrf.mxu1  ;;  %v1016_v45 = vadd.f32 %v1015_v52, %v910_v10  ;;  %v1078_v20 = vadd.f32 %v1077_v38, %v912_v59 }
 0x122   : > { %v584_v24 = vadd.f32 %v583_v39, %v2030_v30  ;;  %v777_v46 = vadd.f32 %v776_v49, %v2032_v31  ;;  %v914_v27 = vmax.f32 %v582_v60, 0.0  ;;  %v916_v49 = vmax.f32 %v775_v62, 0.0 }
 0x123   : > { %v585_v17 = vpop.f32.mrf.mxu0  ;;  %v778_v26 = vpop.f32.mrf.mxu1  ;;  %v986_v4 = vadd.f32 %v985_v0, %v913_v36  ;;  %v1048_v47 = vadd.f32 %v1047_v1, %v915_v7 }
 0x124   : > { %v586_v54 = vadd.f32 %v585_v17, %v2038_v34  ;;  %v779_v57 = vadd.f32 %v778_v26, %v2040_v35  ;;  %v917_v44 = vmax.f32 %v584_v24, 0.0  ;;  %v919_v19 = vmax.f32 %v777_v46, 0.0 }
 0x125   : > { %v589_v33 = vpop.f32.mrf.mxu0  ;;  %v782_v42 = vpop.f32.mrf.mxu1  ;;  %v1017_v51 = vadd.f32 %v1016_v45, %v914_v27 }
 0x126   : > { %v590_v58 = vadd.f32 %v589_v33, %v2030_v30  ;;  %v783_v40 = vadd.f32 %v782_v42, %v2032_v31  ;;  %v918_v23 = vmax.f32 %v586_v54, 0.0  ;;  %v920_v48 = vmax.f32 %v779_v57, 0.0 }
 0x127   : > { %v591_v29 = vpop.f32.mrf.mxu0  ;;  %v784_v18 = vpop.f32.mrf.mxu1  ;;  %v1079_v33 = vadd.f32 %v1078_v20, %v916_v49  ;;  %v987_v25 = vadd.f32 %v986_v4, %v917_v44  ;;  %v1049_v42 = vadd.f32 %v1048_v47, %v919_v19 }
 0x128   : > { %v592_v17 = vadd.f32 %v591_v29, %v2038_v34  ;;  %v785_v26 = vadd.f32 %v784_v18, %v2040_v35  ;;  %v921_v28 = vmax.f32 %v590_v58, 0.0  ;;  %v923_v14 = vmax.f32 %v783_v40, 0.0 }
 0x129   : > { %v593_v11 = vpop.f32.mrf.mxu0  ;;  %v786_v63 = vpop.f32.mrf.mxu1  ;;  %v1018_v3 = vadd.f32 %v1017_v51, %v918_v23  ;;  %v1080_v22 = vadd.f32 %v1079_v33, %v920_v48 }
 0x12a   : > { %v594_v43 = vadd.f32 %v593_v11, %v2030_v30  ;;  %v787_v61 = vadd.f32 %v786_v63, %v2032_v31  ;;  %v922_v53 = vmax.f32 %v592_v17, 0.0  ;;  %v924_v37 = vmax.f32 %v785_v26, 0.0 }
 0x12b   : > { %v595_v13 = vpop.f32.mrf.mxu0  ;;  %v788_v56 = vpop.f32.mrf.mxu1  ;;  %v988_v10 = vadd.f32 %v987_v25, %v921_v28  ;;  %v1050_v59 = vadd.f32 %v1049_v42, %v923_v14 }
 0x12c   : > { %v596_v5 = vadd.f32 %v595_v13, %v2038_v34  ;;  %v789_v29 = vadd.f32 %v788_v56, %v2040_v35  ;;  %v925_v11 = vmax.f32 %v594_v43, 0.0  ;;  %v927_v63 = vmax.f32 %v787_v61, 0.0 }
 0x12d   : > { %v599_v8 = vpop.f32.mrf.mxu0  ;;  %v792_v39 = vpop.f32.mrf.mxu1  ;;  %v1019_v36 = vadd.f32 %v1018_v3, %v922_v53  ;;  %v1081_v7 = vadd.f32 %v1080_v22, %v924_v37 }
 0x12e   : > { %v600_v32 = vadd.f32 %v599_v8, %v2030_v30  ;;  %v793_v12 = vadd.f32 %v792_v39, %v2032_v31  ;;  %v926_v13 = vmax.f32 %v596_v5, 0.0  ;;  %v928_v56 = vmax.f32 %v789_v29, 0.0 }
 0x12f   : > { %v601_v55 = vpop.f32.mrf.mxu0  ;;  %v794_v41 = vpop.f32.mrf.mxu1  ;;  %v989_v54 = vadd.f32 %v988_v10, %v925_v11  ;;  %v1051_v57 = vadd.f32 %v1050_v59, %v927_v63 }
 0x130   : > { %v602_v24 = vadd.f32 %v601_v55, %v2038_v34  ;;  %v795_v46 = vadd.f32 %v794_v41, %v2040_v35  ;;  %v929_v0 = vmax.f32 %v600_v32, 0.0  ;;  %v931_v1 = vmax.f32 %v793_v12, 0.0 }
 0x131   : > { %v603_v50 = vpop.f32.mrf.mxu0  ;;  %v796_v2 = vpop.f32.mrf.mxu1  ;;  %v1020_v58 = vadd.f32 %v1019_v36, %v926_v13  ;;  %v1082_v40 = vadd.f32 %v1081_v7, %v928_v56 }
 0x132   : > { %v604_v15 = vadd.f32 %v603_v50, %v2030_v30  ;;  %v797_v9 = vadd.f32 %v796_v2, %v2032_v31  ;;  %v930_v44 = vmax.f32 %v602_v24, 0.0  ;;  %v932_v19 = vmax.f32 %v795_v46, 0.0 }
 0x133   : > { %v605_v6 = vpop.f32.mrf.mxu0  ;;  %v798_v18 = vpop.f32.mrf.mxu1  ;;  %v990_v17 = vadd.f32 %v989_v54, %v929_v0  ;;  %v1052_v26 = vadd.f32 %v1051_v57, %v931_v1 }
 0x134   : > { %v606_v8 = vadd.f32 %v605_v6, %v2038_v34  ;;  %v799_v39 = vadd.f32 %v798_v18, %v2040_v35  ;;  %v933_v45 = vmax.f32 %v604_v15, 0.0  ;;  %v935_v20 = vmax.f32 %v797_v9, 0.0 }
 0x135   : > { %v609_v60 = vpop.f32.mrf.mxu0  ;;  %v802_v62 = vpop.f32.mrf.mxu1  ;;  %v1021_v25 = vadd.f32 %v1020_v58, %v930_v44  ;;  %v1083_v42 = vadd.f32 %v1082_v40, %v932_v19 }
 0x136   : > { %v610_v55 = vadd.f32 %v609_v60, %v2030_v30  ;;  %v803_v41 = vadd.f32 %v802_v62, %v2032_v31  ;;  %v934_v43 = vmax.f32 %v606_v8, 0.0  ;;  %v936_v61 = vmax.f32 %v799_v39, 0.0 }
 0x137   : > { %v611_v52 = vpop.f32.mrf.mxu0  ;;  %v804_v38 = vpop.f32.mrf.mxu1  ;;  %v991_v28 = vadd.f32 %v990_v17, %v933_v45  ;;  %v1053_v14 = vadd.f32 %v1052_v26, %v935_v20 }
 0x138   : > { %v612_v23 = vadd.f32 %v611_v52, %v2038_v34  ;;  %v805_v48 = vadd.f32 %v804_v38, %v2040_v35  ;;  %v937_v5 = vmax.f32 %v610_v55, 0.0  ;;  %v939_v29 = vmax.f32 %v803_v41, 0.0 }
 0x139   : > { %v613_v27 = vpop.f32.mrf.mxu0  ;;  %v806_v49 = vpop.f32.mrf.mxu1  ;;  %v1022_v11 = vadd.f32 %v1021_v25, %v934_v43  ;;  %v1084_v63 = vadd.f32 %v1083_v42, %v936_v61 }
 0x13a   : > { %v614_v50 = vadd.f32 %v613_v27, %v2030_v30  ;;  %v807_v2 = vadd.f32 %v806_v49, %v2032_v31  ;;  %v938_v32 = vmax.f32 %v612_v23, 0.0  ;;  %v940_v12 = vmax.f32 %v805_v48, 0.0 }
 0x13b   : > { %v615_v4 = vpop.f32.mrf.mxu0  ;;  %v808_v47 = vpop.f32.mrf.mxu1  ;;  %v992_v13 = vadd.f32 %v991_v28, %v937_v5  ;;  %v1054_v56 = vadd.f32 %v1053_v14, %v939_v29 }
 0x13c   : > { %v616_v6 = vadd.f32 %v615_v4, %v2038_v34  ;;  %v809_v18 = vadd.f32 %v808_v47, %v2040_v35  ;;  %v941_v60 = vmax.f32 %v614_v50, 0.0  ;;  %v943_v62 = vmax.f32 %v807_v2, 0.0 }
 0x13d   : > { %v619_v51 = vpop.f32.mrf.mxu0  ;;  %v812_v33 = vpop.f32.mrf.mxu1  ;;  %v1023_v0 = vadd.f32 %v1022_v11, %v938_v32  ;;  %v1085_v1 = vadd.f32 %v1084_v63, %v940_v12 }
 0x13e   : > { %v620_v3 = vadd.f32 %v619_v51, %v2030_v30  ;;  %v813_v22 = vadd.f32 %v812_v33, %v2032_v31  ;;  %v942_v52 = vmax.f32 %v616_v6, 0.0  ;;  %v944_v38 = vmax.f32 %v809_v18, 0.0 }
 0x13f   : > { %v621_v53 = vpop.f32.mrf.mxu0  ;;  %v814_v37 = vpop.f32.mrf.mxu1  ;;  %v993_v8 = vadd.f32 %v992_v13, %v941_v60  ;;  %v1055_v39 = vadd.f32 %v1054_v56, %v943_v62 }
 0x140   : > { %v622_v15 = vadd.f32 %v621_v53, %v2038_v34  ;;  %v815_v9 = vadd.f32 %v814_v37, %v2040_v35  ;;  %v945_v54 = vmax.f32 %v620_v3, 0.0  ;;  %v947_v57 = vmax.f32 %v813_v22, 0.0 }
 0x141   : > { %v623_v24 = vpop.f32.mrf.mxu0  ;;  %v816_v46 = vpop.f32.mrf.mxu1  ;;  %v1024_v55 = vadd.f32 %v1023_v0, %v942_v52  ;;  %v1086_v41 = vadd.f32 %v1085_v1, %v944_v38 }
 0x142   : > { %v624_v10 = vadd.f32 %v623_v24, %v2030_v30  ;;  %v817_v59 = vadd.f32 %v816_v46, %v2032_v31  ;;  %v946_v45 = vmax.f32 %v622_v15, 0.0  ;;  %v948_v20 = vmax.f32 %v815_v9, 0.0 }
 0x143   : > { %v625_v36 = vpop.f32.mrf.mxu0  ;;  %v818_v7 = vpop.f32.mrf.mxu1  ;;  %v994_v23 = vadd.f32 %v993_v8, %v945_v54  ;;  %v1056_v48 = vadd.f32 %v1055_v39, %v947_v57 }
 0x144   : > { %v626_v27 = vadd.f32 %v625_v36, %v2038_v34  ;;  %v819_v49 = vadd.f32 %v818_v7, %v2040_v35  ;;  %v949_v58 = vmax.f32 %v624_v10, 0.0  ;;  %v951_v40 = vmax.f32 %v817_v59, 0.0 }
 0x145   : > { %v629_v44 = vpop.f32.mrf.mxu0  ;;  %v822_v19 = vpop.f32.mrf.mxu1  ;;  %v1025_v25 = vadd.f32 %v1024_v55, %v946_v45  ;;  %v1087_v42 = vadd.f32 %v1086_v41, %v948_v20 }
 0x146   : > { %v630_v4 = vadd.f32 %v629_v44, %v2030_v30  ;;  %v823_v47 = vadd.f32 %v822_v19, %v2032_v31  ;;  %v950_v50 = vmax.f32 %v626_v27, 0.0  ;;  %v952_v2 = vmax.f32 %v819_v49, 0.0 }
 0x147   : > { %v631_v17 = vpop.f32.mrf.mxu0  ;;  %v824_v26 = vpop.f32.mrf.mxu1  ;;  %v995_v28 = vadd.f32 %v994_v23, %v949_v58  ;;  %v1057_v14 = vadd.f32 %v1056_v48, %v951_v40 }
 0x148   : > { %v632_v43 = vadd.f32 %v631_v17, %v2038_v34  ;;  %v825_v61 = vadd.f32 %v824_v26, %v2040_v35  ;;  %v953_v5 = vmax.f32 %v630_v4, 0.0  ;;  %v955_v29 = vmax.f32 %v823_v47, 0.0 }
 0x149   : > { %v633_v51 = vpop.f32.mrf.mxu0  ;;  %v826_v33 = vpop.f32.mrf.mxu1  ;;  %v1026_v11 = vadd.f32 %v1025_v25, %v950_v50  ;;  %v1088_v63 = vadd.f32 %v1087_v42, %v952_v2 }
 0x14a   : > { %v634_v6 = vadd.f32 %v633_v51, %v2030_v30  ;;  %v827_v18 = vadd.f32 %v826_v33, %v2032_v31  ;;  %v954_v32 = vmax.f32 %v632_v43, 0.0  ;;  %v956_v12 = vmax.f32 %v825_v61, 0.0 }
 0x14b   : > { %v635_v53 = vpop.f32.mrf.mxu0  ;;  %v828_v37 = vpop.f32.mrf.mxu1  ;;  %v996_v13 = vadd.f32 %v995_v28, %v953_v5  ;;  %v1058_v56 = vadd.f32 %v1057_v14, %v955_v29 }
 0x14c   : > { %v636_v3 = vadd.f32 %v635_v53, %v2038_v34  ;;  %v829_v22 = vadd.f32 %v828_v37, %v2040_v35  ;;  %v957_v60 = vmax.f32 %v634_v6, 0.0  ;;  %v959_v62 = vmax.f32 %v827_v18, 0.0 }
 0x14d   : > { %v639_v24 = vpop.f32.mrf.mxu0  ;;  %v832_v46 = vpop.f32.mrf.mxu1  ;;  %v1027_v36 = vadd.f32 %v1026_v11, %v954_v32  ;;  %v1089_v7 = vadd.f32 %v1088_v63, %v956_v12 }
 0x14e   : > { %v958_v15 = vmax.f32 %v636_v3, 0.0  ;;  %v960_v9 = vmax.f32 %v829_v22, 0.0  ;;  %v640_v10 = vadd.f32 %v639_v24, %v2030_v30  ;;  %v833_v59 = vadd.f32 %v832_v46, %v2032_v31 }
 0x14f   : > { %v641_v52 = vpop.f32.mrf.mxu0  ;;  %v834_v38 = vpop.f32.mrf.mxu1  ;;  %v997_v54 = vadd.f32 %v996_v13, %v957_v60  ;;  %v1059_v57 = vadd.f32 %v1058_v56, %v959_v62 }
 0x150   : > { %v961_v0 = vmax.f32 %v640_v10, 0.0  ;;  %v963_v1 = vmax.f32 %v833_v59, 0.0  ;;  %v642_v8 = vadd.f32 %v641_v52, %v2038_v34  ;;  %v835_v39 = vadd.f32 %v834_v38, %v2040_v35 }
 0x151   : > { %v643_v27 = vpop.f32.mrf.mxu0  ;;  %v836_v49 = vpop.f32.mrf.mxu1  ;;  %v1028_v44 = vadd.f32 %v1027_v36, %v958_v15  ;;  %v1090_v19 = vadd.f32 %v1089_v7, %v960_v9 }
 0x152   : > { %v644_v45 = vadd.f32 %v643_v27, %v2030_v30  ;;  %v837_v20 = vadd.f32 %v836_v49, %v2032_v31  ;;  %v998_v58 = vadd.f32 %v997_v54, %v961_v0  ;;  %v1060_v40 = vadd.f32 %v1059_v57, %v963_v1  ;;  %v1189_v54 = vld [vmem:[%s2312_s4] sm:$0x1] }
 0x153   : > { %v962_v55 = vmax.f32 %v642_v8, 0.0  ;;  %v964_v41 = vmax.f32 %v835_v39, 0.0  ;;  %v645_v4 = vpop.f32.mrf.mxu0  ;;  %v838_v47 = vpop.f32.mrf.mxu1 }
 0x154   : > { %v965_v17 = vmax.f32 %v644_v45, 0.0  ;;  %v967_v26 = vmax.f32 %v837_v20, 0.0  ;;  %v646_v23 = vadd.f32 %v645_v4, %v2038_v34  ;;  %v839_v48 = vadd.f32 %v838_v47, %v2040_v35 }
 0x155   : > { %v1029_v43 = vadd.f32 %v1028_v44, %v962_v55  ;;  %v1091_v61 = vadd.f32 %v1090_v19, %v964_v41 }
 0x156   : > { %v999_v50 = vadd.f32 %v998_v58, %v965_v17  ;;  %v1061_v2 = vadd.f32 %v1060_v40, %v967_v26  ;;  %v966_v51 = vmax.f32 %v646_v23, 0.0  ;;  %v968_v30 = vmax.f32 %v839_v48, 0.0 }
 0x158   : > { %v1093_v33 = vrot.slane %v999_v50, 4  ;;  %v1105_v31 = vrot.slane %v1061_v2, 4  ;;  %v1030_v25 = vadd.f32 %v1029_v43, %v966_v51  ;;  %v1092_v42 = vadd.f32 %v1091_v61, %v968_v30 }
 0x15a   : > { %v1094_v28 = vadd.f32 %v1093_v33, %v999_v50  ;;  %v1106_v14 = vadd.f32 %v1105_v31, %v1061_v2  ;;  %v1099_v5 = vrot.slane %v1030_v25, 4  ;;  %v1111_v29 = vrot.slane %v1092_v42, 4 }
 0x15c   : > { %v1095_v6 = vrot.slane %v1094_v28, 2  ;;  %v1107_v18 = vrot.slane %v1106_v14, 2  ;;  %v1100_v53 = vadd.f32 %v1099_v5, %v1030_v25  ;;  %v1112_v34 = vadd.f32 %v1111_v29, %v1092_v42 }
 0x15e   : > { %v1096_v37 = vadd.f32 %v1095_v6, %v1094_v28  ;;  %v1108_v35 = vadd.f32 %v1107_v18, %v1106_v14  ;;  %v1101_v32 = vrot.slane %v1100_v53, 2  ;;  %v1113_v12 = vrot.slane %v1112_v34, 2 }
 0x160   : > { %v1097_v3 = vrot.slane %v1096_v37, 1  ;;  %v1109_v22 = vrot.slane %v1108_v35, 1  ;;  %v1102_v11 = vadd.f32 %v1101_v32, %v1100_v53  ;;  %v1114_v63 = vadd.f32 %v1113_v12, %v1112_v34 }
 0x162   : > { %v1098_v60 = vadd.f32 %v1097_v3, %v1096_v37  ;;  %v1110_v62 = vadd.f32 %v1109_v22, %v1108_v35  ;;  %v1103_v24 = vrot.slane %v1102_v11, 1  ;;  %v1115_v46 = vrot.slane %v1114_v63, 1 }
 0x164   : > { %v1104_v15 = vadd.f32 %v1103_v24, %v1102_v11  ;;  %v1116_v9 = vadd.f32 %v1115_v46, %v1114_v63  ;;  %v1117_v10 = vmul.f32 0.00390625, %v1098_v60  ;;  %v1119_v59 = vmul.f32 0.00390625, %v1110_v62 }
 0x166   : > { %v1118_v13 = vmul.f32 0.00390625, %v1104_v15  ;;  %v1120_v56 = vmul.f32 0.00390625, %v1116_v9  ;;  %v1121_v36 = vpack.c.bf16 %v1117_v10, %v1117_v10  ;;  %v1123_v7 = vpack.c.bf16 %v1119_v59, %v1119_v59 }
 0x168   : > { %v1122_v52 = vpack.c.bf16 %v1118_v13, %v1118_v13  ;;  %v1124_v38 = vpack.c.bf16 %v1120_v56, %v1120_v56 }
 0x16a   : > { %1414 = vmatprep.mubr.bf16.mxu0 %v1122_v52  ;;  %1454 = vmatprep.mubr.bf16.mxu1 %v1124_v38 }
 0x16b   : > { %1415 = vmatmul.mubr.bf16.vlgmr.msra.gmra.mxu0 %v1121_v36  ;;  %1455 = vmatmul.mubr.bf16.vlgmr.msra.gmra.mxu1 %v1123_v7 }
 0x22b   : > { %v1635_v0 = vpop.f32.mrf.mxu0  ;;  %v1657_v1 = vpop.f32.mrf.mxu1 }
 0x22d   : > { %v1636_v57 = vpop.f32.mrf.mxu0  ;;  %v1658_v8 = vpop.f32.mrf.mxu1 }
 0x22e   : > { %v1637_v39 = vadd.f32 %v1636_v57, %v1635_v0  ;;  %v1659_v19 = vadd.f32 %v1658_v8, %v1657_v1 }
 0x22f   : > { %v1638_v27 = vpop.f32.mrf.mxu0  ;;  %v1660_v49 = vpop.f32.mrf.mxu1 }
 0x230   : > { %v1417_v44 = vadd.f32 %v1637_v39, %v1189_v54 }
 0x231   : > { %v1639_v45 = vpop.f32.mrf.mxu0  ;;  %v1661_v20 = vpop.f32.mrf.mxu1 }
 0x232   : > { %v1457_v58 = vadd.f32 %v1659_v19, %v1417_v44 }
 0x234   : > { %v1465_v40 = vrot.slane %v1457_v58, %v268_v21 }
 0x236   : > { %1466 = vst [vmem:[%s222_s17] sm:$0xff] %v1465_v40 }
 0x237 PF: > { %s15_s18 = sadd.s32 1, %s1738_s18  }
 0x238   : > { %p12_p4 = scmp.ge.s32.totalorder %s15_s18, 4  }
 0x23a   :  { %14 = sbr.rel (!%p12_p4) target bundleno = 1 (0x1), region = 70 }

</bundles_post_ra>
